<compile_context>
chip_gen: v5e
topology: v5e:2x2
jax: 0.10.0
libtpu: 0.0.40
codegen_flags: <defaults>
</compile_context>

<pallas_src>
import jax
import jax.numpy as jnp
from jax.experimental import pallas as pl
from jax.experimental.pallas import tpu as pltpu

# ---- module hyper-parameters (PyTorch defaults) ----
IN_CHANS = 4
N_FILTERS_TIME = 40
FILTER_TIME_LENGTH = 25
N_FILTERS_SPAT = 40
POOL_TIME_LENGTH = 150
POOL_TIME_STRIDE = 15
BN_EPS = 1e-5            # nn.BatchNorm2d default eps
SAFE_LOG_EPS = 1e-6


def shallownet_kernel(x_ref, w2_ref, gamma_ref, beta_ref, pmask_ref, out_ref):
    """Single-program fused kernel; everything resident in VMEM.

    x_ref:     (B*C, T)          input signal, row b*C+c, bf16
    w2_ref:    (B*G, Kt*B*C)     block-expanded fused conv weight, bf16
    gamma_ref: (G, 1)            BN scale, f32
    beta_ref:  (G, 1)            BN shift, f32
    pmask_ref: (T1, T_pool)      0/1 pooling mask, bf16 (1/P applied in f32)
    out_ref:   (B*G, T_pool)     pooled log-power features (row b*G+g), f32
    """
    BC, T = x_ref.shape
    BG, KBC = w2_ref.shape
    T1, T_pool = pmask_ref.shape
    Kt = KBC // BC
    G = gamma_ref.shape[0]
    B = BG // G

    # ---- im2col once over the full 8-sublane block (tile-aligned concat) ----
    x_all = x_ref[...]                                         # (B*C, T) bf16
    # row index k*(B*C) + b*C + c matches w2's column layout
    cols = jnp.concatenate([x_all[:, k:k + T1] for k in range(Kt)], axis=0)

    # ---- one MXU matmul = conv_time ∘ conv_spat for ALL batches at once ----
    slab = jnp.dot(w2_ref[...], cols,
                   preferred_element_type=jnp.float32)         # (B*G, T1) f32

    # ---- BatchNorm2d, training-mode batch statistics, two-pass (f32) ----
    inv_n = 1.0 / float(B * T1)
    s_row = jnp.sum(slab, axis=-1, keepdims=True)              # (B*G, 1)
    s = s_row[0:G, :]
    for b in range(1, B):                                      # fold batch blocks
        s = s + s_row[b * G:(b + 1) * G, :]
    mean = s * inv_n                                           # (G, 1)
    mean_all = jnp.concatenate([mean] * B, axis=0)             # (B*G, 1)
    centered = slab - mean_all

    q_row = jnp.sum(centered * centered, axis=-1, keepdims=True)
    q = q_row[0:G, :]
    for b in range(1, B):
        q = q + q_row[b * G:(b + 1) * G, :]
    var = q * inv_n                                            # biased variance
    scale = gamma_ref[...] * jax.lax.rsqrt(var + BN_EPS)       # (G, 1)
    scale_all = jnp.concatenate([scale] * B, axis=0)           # (B*G, 1)
    beta_all = jnp.concatenate([beta_ref[...]] * B, axis=0)    # (B*G, 1)

    # ---- BN apply + square (f32), pool via bf16 MXU matmul, safe_log ----
    y = centered * scale_all + beta_all
    y = y * y                                                  # square nonlinearity
    pooled_sum = jnp.dot(y.astype(jnp.bfloat16), pmask_ref[...],
                         preferred_element_type=jnp.float32)   # (B*G, T_pool)
    pooled = pooled_sum * (1.0 / float(POOL_TIME_LENGTH))      # exact avg scale in f32
    out_ref[...] = jnp.log(jnp.maximum(pooled, SAFE_LOG_EPS))
    # TODO(synk): nn.Dropout(p=0.5) train-mode stochastic masking omitted;
    # inference semantics (identity) are used here.


def shallownet_forward(x, w_time, b_time, w_spat, gamma, beta):
    """x: (B, in_chans, T) float32. Returns (B, n_filters_spat * T_pool)."""
    B, C, T = x.shape
    F, Kt = N_FILTERS_TIME, FILTER_TIME_LENGTH
    G = N_FILTERS_SPAT
    T1 = T - Kt + 1
    P, S = POOL_TIME_LENGTH, POOL_TIME_STRIDE
    T_pool = (T1 - P) // S + 1

    # ---- glue: fuse the two conv layers and fold batch into the weight ----
    # conv_time's bias is a per-channel constant exactly cancelled by the
    # training-mode BN mean subtraction -> intentionally dropped from the kernel.
    del b_time
    wt = w_time.reshape(F, Kt).astype(jnp.float32)               # (F,1,Kt,1) -> (F,Kt)
    ws = w_spat.reshape(G, F, C).astype(jnp.float32)             # (G,F,1,C)  -> (G,F,C)
    wc = jnp.einsum('gfc,fk->gkc', ws, wt)                       # (G, Kt, C)
    # W2[b*G+g, k*(B*C)+d*C+c] = wc[g,k,c] * delta(b,d)
    w2 = jnp.einsum('gkc,bd->bgkdc', wc, jnp.eye(B, dtype=jnp.float32))
    w2 = w2.reshape(B * G, Kt * B * C)

    gm = gamma.reshape(G, 1).astype(jnp.float32)
    be = beta.reshape(G, 1).astype(jnp.float32)

    # ---- avg-pool as a matmul: 0/1 window mask (bf16-exact); 1/P in kernel ----
    t_idx = jnp.arange(T1)[:, None]
    tp_idx = jnp.arange(T_pool)[None, :]
    pmask = ((t_idx >= tp_idx * S) & (t_idx < tp_idx * S + P)).astype(jnp.bfloat16)

    flops = (2 * (B * G) * (Kt * B * C) * T1        # fused conv matmul
             + 2 * (B * G) * T1 * T_pool            # pooling matmul
             + 8 * (B * G) * T1)                    # BN / center / square elementwise
    bytes_accessed = (B * C * T * 2 + (B * G) * (Kt * B * C) * 2
                      + 2 * G * 4 + T1 * T_pool * 2 + (B * G) * T_pool * 4)
    cost = pl.CostEstimate(flops=flops,
                           transcendentals=G + (B * G) * T_pool,   # rsqrt + log
                           bytes_accessed=bytes_accessed)

    out2d = pl.pallas_call(
        shallownet_kernel,
        out_shape=jax.ShapeDtypeStruct((B * G, T_pool), jnp.float32),
        in_specs=[pl.BlockSpec(memory_space=pltpu.MemorySpace.VMEM)] * 5,
        out_specs=pl.BlockSpec(memory_space=pltpu.MemorySpace.VMEM),
        cost_estimate=cost,
    )(x.reshape(B * C, T).astype(jnp.bfloat16), w2.astype(jnp.bfloat16),
      gm, be, pmask)

    # Row b*G+g, col tp  ->  (B, G*T_pool) with flat index g*T_pool + tp,
    # identical to torch's reshape(x.size(0), -1) on (B, G, T_pool, 1).
    return out2d.reshape(B, G * T_pool)


def reference_forward(x, w_time, b_time, w_spat, gamma, beta):
    """Pure-JAX f32 reference (same math incl. conv bias) for sanity checking."""
    B, C, T = x.shape
    F, Kt = N_FILTERS_TIME, FILTER_TIME_LENGTH
    G = N_FILTERS_SPAT
    T1 = T - Kt + 1
    wt = w_time.reshape(F, Kt)
    ws = w_spat.reshape(G, F, C)
    cols = jnp.stack([x[:, :, k:k + T1] for k in range(Kt)], axis=-1)  # (B,C,T1,Kt)
    out1 = jnp.einsum('bctk,fk->bftc', cols, wt) + b_time[None, :, None, None]
    out2 = jnp.einsum('bftc,gfc->bgt', out1, ws)                       # (B,G,T1)
    mean = out2.mean(axis=(0, 2), keepdims=True)
    var = ((out2 - mean) ** 2).mean(axis=(0, 2), keepdims=True)
    y = (out2 - mean) / jnp.sqrt(var + BN_EPS) * gamma[None, :, None] + beta[None, :, None]
    y = y * y
    P, S = POOL_TIME_LENGTH, POOL_TIME_STRIDE
    T_pool = (T1 - P) // S + 1
    pooled = jnp.stack([y[:, :, tp * S: tp * S + P].mean(axis=-1)
                        for tp in range(T_pool)], axis=-1)
    return jnp.log(jnp.maximum(pooled, SAFE_LOG_EPS)).reshape(B, -1)


def xavier_uniform(key, shape, fan_in, fan_out):
    bound = (6.0 / float(fan_in + fan_out)) ** 0.5
    return jax.random.uniform(key, shape, jnp.float32, -bound, bound)


if __name__ == "__main__":
    key = jax.random.PRNGKey(0)
    kx, k1, k2, kb = jax.random.split(key, 4)

    B, T = 2, 200                      # T >= 174 so pooling yields T_pool = 2
    x = jax.random.normal(kx, (B, IN_CHANS, T), jnp.float32)

    # Deterministic parameter init mirroring the module's __init__ shapes.
    w_time = xavier_uniform(
        k1, (N_FILTERS_TIME, 1, FILTER_TIME_LENGTH, 1),
        fan_in=1 * FILTER_TIME_LENGTH, fan_out=N_FILTERS_TIME * FILTER_TIME_LENGTH)
    # Module inits this bias to 0; use a nonzero value here to verify that the
    # kernel's bias-drop (cancelled by training-mode BN) is exact.
    b_time = 0.1 * jax.random.normal(kb, (N_FILTERS_TIME,), jnp.float32)
    w_spat = xavier_uniform(
        k2, (N_FILTERS_SPAT, N_FILTERS_TIME, 1, IN_CHANS),
        fan_in=N_FILTERS_TIME * IN_CHANS, fan_out=N_FILTERS_SPAT * IN_CHANS)
    gamma = jnp.ones((N_FILTERS_SPAT,), jnp.float32)            # BN weight = 1
    beta = jnp.zeros((N_FILTERS_SPAT,), jnp.float32)            # BN bias = 0

    out = shallownet_forward(x, w_time, b_time, w_spat, gamma, beta)
    out = jax.block_until_ready(out)

    ref = reference_forward(x, w_time, b_time, w_spat, gamma, beta)
    T1 = T - FILTER_TIME_LENGTH + 1
    T_pool = (T1 - POOL_TIME_LENGTH) // POOL_TIME_STRIDE + 1
    assert out.shape == (B, N_FILTERS_SPAT * T_pool), out.shape
    # bf16 matmul inputs (f32 accumulation) -> slightly relaxed tolerance.
    assert bool(jnp.allclose(out, ref, rtol=2e-2, atol=2e-2)), "mismatch vs reference"

    print("KERNEL_OK")
</pallas_src>

<mosaic_0001>
module attributes {stable_mosaic.version = 11 : i64} {
  func.func @shallownet_kernel(%arg0: memref<8x200xbf16, #tpu.memory_space<vmem>>, %arg1: memref<80x200xbf16, #tpu.memory_space<vmem>>, %arg2: memref<40x1xf32, #tpu.memory_space<vmem>>, %arg3: memref<40x1xf32, #tpu.memory_space<vmem>>, %arg4: memref<176x2xbf16, #tpu.memory_space<vmem>>, %arg5: memref<80x2xf32, #tpu.memory_space<vmem>>) attributes {dimension_semantics = [], scalar_prefetch = 0 : i64, scratch_operands = 0 : i64, tpu.core_type = #tpu.core_type<tc>} {
    %c0 = arith.constant 0 : index
    %c0_0 = arith.constant 0 : index
    %0 = vector.load %arg0[%c0, %c0_0] : memref<8x200xbf16, #tpu.memory_space<vmem>>, vector<8x200xbf16>
    %1 = vector.extract_strided_slice %0 {offsets = [0, 0], sizes = [8, 176], strides = [1, 1]} : vector<8x200xbf16> to vector<8x176xbf16>
    %2 = vector.extract_strided_slice %0 {offsets = [0, 1], sizes = [8, 176], strides = [1, 1]} : vector<8x200xbf16> to vector<8x176xbf16>
    %3 = vector.extract_strided_slice %0 {offsets = [0, 2], sizes = [8, 176], strides = [1, 1]} : vector<8x200xbf16> to vector<8x176xbf16>
    %4 = vector.extract_strided_slice %0 {offsets = [0, 3], sizes = [8, 176], strides = [1, 1]} : vector<8x200xbf16> to vector<8x176xbf16>
    %5 = vector.extract_strided_slice %0 {offsets = [0, 4], sizes = [8, 176], strides = [1, 1]} : vector<8x200xbf16> to vector<8x176xbf16>
    %6 = vector.extract_strided_slice %0 {offsets = [0, 5], sizes = [8, 176], strides = [1, 1]} : vector<8x200xbf16> to vector<8x176xbf16>
    %7 = vector.extract_strided_slice %0 {offsets = [0, 6], sizes = [8, 176], strides = [1, 1]} : vector<8x200xbf16> to vector<8x176xbf16>
    %8 = vector.extract_strided_slice %0 {offsets = [0, 7], sizes = [8, 176], strides = [1, 1]} : vector<8x200xbf16> to vector<8x176xbf16>
    %9 = vector.extract_strided_slice %0 {offsets = [0, 8], sizes = [8, 176], strides = [1, 1]} : vector<8x200xbf16> to vector<8x176xbf16>
    %10 = vector.extract_strided_slice %0 {offsets = [0, 9], sizes = [8, 176], strides = [1, 1]} : vector<8x200xbf16> to vector<8x176xbf16>
    %11 = vector.extract_strided_slice %0 {offsets = [0, 10], sizes = [8, 176], strides = [1, 1]} : vector<8x200xbf16> to vector<8x176xbf16>
    %12 = vector.extract_strided_slice %0 {offsets = [0, 11], sizes = [8, 176], strides = [1, 1]} : vector<8x200xbf16> to vector<8x176xbf16>
    %13 = vector.extract_strided_slice %0 {offsets = [0, 12], sizes = [8, 176], strides = [1, 1]} : vector<8x200xbf16> to vector<8x176xbf16>
    %14 = vector.extract_strided_slice %0 {offsets = [0, 13], sizes = [8, 176], strides = [1, 1]} : vector<8x200xbf16> to vector<8x176xbf16>
    %15 = vector.extract_strided_slice %0 {offsets = [0, 14], sizes = [8, 176], strides = [1, 1]} : vector<8x200xbf16> to vector<8x176xbf16>
    %16 = vector.extract_strided_slice %0 {offsets = [0, 15], sizes = [8, 176], strides = [1, 1]} : vector<8x200xbf16> to vector<8x176xbf16>
    %17 = vector.extract_strided_slice %0 {offsets = [0, 16], sizes = [8, 176], strides = [1, 1]} : vector<8x200xbf16> to vector<8x176xbf16>
    %18 = vector.extract_strided_slice %0 {offsets = [0, 17], sizes = [8, 176], strides = [1, 1]} : vector<8x200xbf16> to vector<8x176xbf16>
    %19 = vector.extract_strided_slice %0 {offsets = [0, 18], sizes = [8, 176], strides = [1, 1]} : vector<8x200xbf16> to vector<8x176xbf16>
    %20 = vector.extract_strided_slice %0 {offsets = [0, 19], sizes = [8, 176], strides = [1, 1]} : vector<8x200xbf16> to vector<8x176xbf16>
    %21 = vector.extract_strided_slice %0 {offsets = [0, 20], sizes = [8, 176], strides = [1, 1]} : vector<8x200xbf16> to vector<8x176xbf16>
    %22 = vector.extract_strided_slice %0 {offsets = [0, 21], sizes = [8, 176], strides = [1, 1]} : vector<8x200xbf16> to vector<8x176xbf16>
    %23 = vector.extract_strided_slice %0 {offsets = [0, 22], sizes = [8, 176], strides = [1, 1]} : vector<8x200xbf16> to vector<8x176xbf16>
    %24 = vector.extract_strided_slice %0 {offsets = [0, 23], sizes = [8, 176], strides = [1, 1]} : vector<8x200xbf16> to vector<8x176xbf16>
    %25 = vector.extract_strided_slice %0 {offsets = [0, 24], sizes = [8, 176], strides = [1, 1]} : vector<8x200xbf16> to vector<8x176xbf16>
    %26 = tpu.concatenate %1, %2, %3, %4, %5, %6, %7, %8, %9, %10, %11, %12, %13, %14, %15, %16 in 0 : vector<8x176xbf16>, vector<8x176xbf16>, vector<8x176xbf16>, vector<8x176xbf16>, vector<8x176xbf16>, vector<8x176xbf16>, vector<8x176xbf16>, vector<8x176xbf16>, vector<8x176xbf16>, vector<8x176xbf16>, vector<8x176xbf16>, vector<8x176xbf16>, vector<8x176xbf16>, vector<8x176xbf16>, vector<8x176xbf16>, vector<8x176xbf16> -> vector<128x176xbf16>
    %27 = tpu.concatenate %17, %18, %19, %20, %21, %22, %23, %24, %25 in 0 : vector<8x176xbf16>, vector<8x176xbf16>, vector<8x176xbf16>, vector<8x176xbf16>, vector<8x176xbf16>, vector<8x176xbf16>, vector<8x176xbf16>, vector<8x176xbf16>, vector<8x176xbf16> -> vector<72x176xbf16>
    %28 = tpu.concatenate %26, %27 in 0 : vector<128x176xbf16>, vector<72x176xbf16> -> vector<200x176xbf16>
    %c0_1 = arith.constant 0 : index
    %c0_2 = arith.constant 0 : index
    %29 = vector.load %arg1[%c0_1, %c0_2] : memref<80x200xbf16, #tpu.memory_space<vmem>>, vector<80x200xbf16>
    %cst = arith.constant dense<0.000000e+00> : vector<80x176xf32>
    %30 = tpu.matmul %29, %28, %cst {dimension_numbers = #tpu.dot_dimension_numbers<[1], [0], [0], [1], [0, 0, 1, 1], [], []>} : vector<80x200xbf16>, vector<200x176xbf16>, vector<80x176xf32> -> vector<80x176xf32>
    %cst_3 = arith.constant dense<0.000000e+00> : vector<80xf32>
    %31 = vector.multi_reduction <add>, %30, %cst_3 [1] : vector<80x176xf32> to vector<80xf32>
    %32 = vector.shape_cast %31 : vector<80xf32> to vector<80x1xf32>
    %33 = vector.extract_strided_slice %32 {offsets = [0, 0], sizes = [40, 1], strides = [1, 1]} : vector<80x1xf32> to vector<40x1xf32>
    %34 = vector.extract_strided_slice %32 {offsets = [40, 0], sizes = [40, 1], strides = [1, 1]} : vector<80x1xf32> to vector<40x1xf32>
    %35 = arith.addf %33, %34 : vector<40x1xf32>
    %cst_4 = arith.constant 0.00284090918 : f32
    %36 = vector.broadcast %cst_4 : f32 to vector<40x1xf32>
    %37 = arith.mulf %35, %36 : vector<40x1xf32>
    %38 = tpu.concatenate %37, %37 in 0 : vector<40x1xf32>, vector<40x1xf32> -> vector<80x1xf32>
    %39 = vector.broadcast %38 : vector<80x1xf32> to vector<80x176xf32>
    %40 = arith.subf %30, %39 : vector<80x176xf32>
    %41 = arith.mulf %40, %40 : vector<80x176xf32>
    %cst_5 = arith.constant dense<0.000000e+00> : vector<80xf32>
    %42 = vector.multi_reduction <add>, %41, %cst_5 [1] : vector<80x176xf32> to vector<80xf32>
    %43 = vector.shape_cast %42 : vector<80xf32> to vector<80x1xf32>
    %44 = vector.extract_strided_slice %43 {offsets = [0, 0], sizes = [40, 1], strides = [1, 1]} : vector<80x1xf32> to vector<40x1xf32>
    %45 = vector.extract_strided_slice %43 {offsets = [40, 0], sizes = [40, 1], strides = [1, 1]} : vector<80x1xf32> to vector<40x1xf32>
    %46 = arith.addf %44, %45 : vector<40x1xf32>
    %cst_6 = arith.constant 0.00284090918 : f32
    %47 = vector.broadcast %cst_6 : f32 to vector<40x1xf32>
    %48 = arith.mulf %46, %47 : vector<40x1xf32>
    %c0_7 = arith.constant 0 : index
    %c0_8 = arith.constant 0 : index
    %49 = vector.load %arg2[%c0_7, %c0_8] : memref<40x1xf32, #tpu.memory_space<vmem>>, vector<40x1xf32>
    %cst_9 = arith.constant 9.99999974E-6 : f32
    %50 = vector.broadcast %cst_9 : f32 to vector<40x1xf32>
    %51 = arith.addf %48, %50 : vector<40x1xf32>
    %52 = math.rsqrt %51 : vector<40x1xf32>
    %53 = arith.mulf %49, %52 : vector<40x1xf32>
    %54 = tpu.concatenate %53, %53 in 0 : vector<40x1xf32>, vector<40x1xf32> -> vector<80x1xf32>
    %c0_10 = arith.constant 0 : index
    %c0_11 = arith.constant 0 : index
    %55 = vector.load %arg3[%c0_10, %c0_11] : memref<40x1xf32, #tpu.memory_space<vmem>>, vector<40x1xf32>
    %56 = tpu.concatenate %55, %55 in 0 : vector<40x1xf32>, vector<40x1xf32> -> vector<80x1xf32>
    %57 = vector.broadcast %54 : vector<80x1xf32> to vector<80x176xf32>
    %58 = arith.mulf %40, %57 : vector<80x176xf32>
    %59 = vector.broadcast %56 : vector<80x1xf32> to vector<80x176xf32>
    %60 = arith.addf %58, %59 : vector<80x176xf32>
    %61 = arith.mulf %60, %60 : vector<80x176xf32>
    %62 = arith.truncf %61 : vector<80x176xf32> to vector<80x176xbf16>
    %c0_12 = arith.constant 0 : index
    %c0_13 = arith.constant 0 : index
    %63 = vector.load %arg4[%c0_12, %c0_13] : memref<176x2xbf16, #tpu.memory_space<vmem>>, vector<176x2xbf16>
    %cst_14 = arith.constant dense<0.000000e+00> : vector<80x2xf32>
    %64 = tpu.matmul %62, %63, %cst_14 {dimension_numbers = #tpu.dot_dimension_numbers<[1], [0], [0], [1], [0, 0, 1, 1], [], []>} : vector<80x176xbf16>, vector<176x2xbf16>, vector<80x2xf32> -> vector<80x2xf32>
    %cst_15 = arith.constant 0.00666666683 : f32
    %65 = vector.broadcast %cst_15 : f32 to vector<80x2xf32>
    %66 = arith.mulf %64, %65 : vector<80x2xf32>
    %cst_16 = arith.constant 9.99999997E-7 : f32
    %67 = vector.broadcast %cst_16 : f32 to vector<80x2xf32>
    %68 = arith.maximumf %66, %67 : vector<80x2xf32>
    %69 = math.log %68 : vector<80x2xf32>
    %c0_17 = arith.constant 0 : index
    %c0_18 = arith.constant 0 : index
    %70 = vector.load %arg5[%c0_17, %c0_18] : memref<80x2xf32, #tpu.memory_space<vmem>>, vector<80x2xf32>
    tpu.vector_store %arg5[%c0_17, %c0_18], %69 {strides = array<i32>} : memref<80x2xf32, #tpu.memory_space<vmem>>, vector<80x2xf32>,
    return
  }
}

</mosaic_0001>

<bundles_post_ra>
// kernel: tpu_custom_call.1
= control target key start
LH: loop header
LB: loop body
LE: loop exit
PB: predicated region body
PF: predicated region fallthrough
CT: control target
= control target key end

     0   :  { %s1199_s20 = smov 116   ;;  %s1200_s21 = smov 114   ;;  %vm109_vm0 = vcmask 932864   ;;  %vm115_vm1 = vcmask 924672   ;;  %vm117_vm2 = vcmask 1043456   ;;  %vm97_vm3 = vcmask 949248   ;;  %s1708_s0 = inlined_call_operand.vmem [shape: bf16[8,200], index: 0, kind: input, shape index: {}]   ;;  %s1709_s1 = inlined_call_operand.vmem [shape: bf16[80,200], index: 1, kind: input, shape index: {}]   ;;  %s1710_s3 = inlined_call_operand.vmem [shape: f32[40,1], index: 3, kind: input, shape index: {}]   ;;  %s1711_s2 = inlined_call_operand.vmem [shape: f32[40,1], index: 2, kind: input, shape index: {}]   ;;  %s1712_s4 = inlined_call_operand.vmem [shape: bf16[176,2], index: 4, kind: input, shape index: {}]   ;;  %s1713_s5 = inlined_call_operand.vmem [shape: f32[80,2], index: 5, kind: output, shape index: {}]  }
   0x1   :  { %v21_v0 = vld [vmem:[%s1708_s0] sm:$0xff]  ;;  %s1201_s22 = smov 115   ;;  %s1202_s23 = smov 113   ;;  %vm103_vm4 = vcmask 941056   ;;  %vm91_vm5 = vcmask 957440   ;;  %vm85_vm6 = vcmask 965632  }
   0x2   :  { %v24_v1 = vunpack.c.h.b16 %v21_v0  ;;  %v23_v2 = vunpack.c.l.b16 %v21_v0  ;;  %s1203_s0 = smov 117   ;;  %s1204_s24 = smov 118   ;;  %vm79_vm7 = vcmask 973824   ;;  %vm73_vm8 = vcmask 982016   ;;  %v1021_v52 = vld [vmem:[%s1709_s1] sm:$0xf] }
   0x3   :  { %s1205_s25 = smov 120   ;;  %s1206_s26 = smov 119   ;;  %vm61_vm9 = vcmask 998400   ;;  %vm67_vm10 = vcmask 990208   ;;  %v1119_v53 = vld [vmem:[%s1709_s1 + $0x4] sm:$0xf0] }
   0x4   :  { %v1249_v3 = vpack.c.b16 %v24_v1, %v24_v1  ;;  %v1251_v4 = vpack.c.b16 %v23_v2, %v23_v2  ;;  %s1207_s27 = smov 122   ;;  %s1208_s28 = smov 121   ;;  %v1022_v55 = vor.u32 %v1119_v53, %v1021_v52  ;;  %vm55_vm11 = vcmask 1006592  }
   0x5   :  { %s1209_s29 = smov 123   ;;  %s1210_s30 = smov 124   ;;  %vm49_vm12 = vcmask 1014784   ;;  %vm31_vm13 = vcmask 1039360   ;;  %vm43_vm14 = vcmask 1022976   ;;  %vm37_vm15 = vcmask 1031168  }
   0x6   :  { %95 = vrot.lane.b32.xlu1 %v1249_v3, %s1199_s20  ;;  %107 = vrot.lane.b32.xlu0 %v1249_v3, %s1200_s21  ;;  %s1211_s6 = smov 126   ;;  %s1212_s7 = smov 125  }
   0x7   :  { %105 = vrot.lane.b32.xlu2 %v1251_v4, %s1200_s21  ;;  %s1213_s8 = smov 127   ;;  %s1214_s9 = smov 112  }
   0xe   :  { %101 = vrot.lane.b32.xlu1 %v1249_v3, %s1201_s22  ;;  %113 = vrot.lane.b32.xlu0 %v1249_v3, %s1202_s23 }
   0xf   :  { %111 = vrot.lane.b32.xlu2 %v1251_v4, %s1202_s23 }
  0x16   :  { %89 = vrot.lane.b32.xlu1 %v1249_v3, %s1203_s0  ;;  %83 = vrot.lane.b32.xlu0 %v1249_v3, %s1204_s24 }
  0x17   :  { %93 = vrot.lane.b32.xlu2 %v1251_v4, %s1199_s20 }
  0x1e   :  { %71 = vrot.lane.b32.xlu1 %v1249_v3, %s1205_s25  ;;  %99 = vrot.lane.b32.xlu0 %v1251_v4, %s1201_s22 }
  0x1f   :  { %77 = vrot.lane.b32.xlu2 %v1249_v3, %s1206_s26 }
  0x26   :  { %87 = vrot.lane.b32.xlu1 %v1251_v4, %s1203_s0  ;;  %81 = vrot.lane.b32.xlu0 %v1251_v4, %s1204_s24 }
  0x27   :  { %59 = vrot.lane.b32.xlu2 %v1249_v3, %s1207_s27 }
  0x2e   :  { %69 = vrot.lane.b32.xlu1 %v1251_v4, %s1205_s25  ;;  %65 = vrot.lane.b32.xlu0 %v1249_v3, %s1208_s28 }
  0x2f   :  { %75 = vrot.lane.b32.xlu2 %v1251_v4, %s1206_s26 }
  0x36   :  { %53 = vrot.lane.b32.xlu1 %v1249_v3, %s1209_s29  ;;  %47 = vrot.lane.b32.xlu0 %v1249_v3, %s1210_s30 }
  0x37   :  { %57 = vrot.lane.b32.xlu2 %v1251_v4, %s1207_s27 }
  0x3e   :  { %35 = vrot.lane.b32.xlu1 %v1249_v3, %s1211_s6  ;;  %63 = vrot.lane.b32.xlu0 %v1251_v4, %s1208_s28 }
  0x3f   :  { %41 = vrot.lane.b32.xlu2 %v1249_v3, %s1212_s7 }
  0x46   :  { %51 = vrot.lane.b32.xlu1 %v1251_v4, %s1209_s29  ;;  %45 = vrot.lane.b32.xlu0 %v1251_v4, %s1210_s30 }
  0x47   :  { %29 = vrot.lane.b32.xlu2 %v1249_v3, %s1213_s8 }
  0x4e   :  { %39 = vrot.lane.b32.xlu1 %v1251_v4, %s1212_s7  ;;  %33 = vrot.lane.b32.xlu0 %v1251_v4, %s1211_s6 }
  0x4f   :  { %27 = vrot.lane.b32.xlu2 %v1251_v4, %s1213_s8 }
  0x61   :  { %v106_v5 = vpop.permute.xlu2 %105 }
  0x69   :  { %v112_v6 = vpop.permute.xlu2 %111 }
  0x71   :  { %v94_v7 = vpop.permute.xlu2 %93 }
  0x78   :  { %v96_v8 = vpop.permute.xlu1 %95  ;;  %v108_v9 = vpop.permute.xlu0 %107 }
  0x79   :  { %v110_v12 = vsel %vm109_vm0, %v106_v5, %v108_v9  ;;  %v78_v15 = vpop.permute.xlu2 %77  ;;  %v98_v24 = vsel %vm97_vm3, %v94_v7, %v96_v8  ;;  %v1029_v5 = vld [vmem:[%s1709_s1 + $0x10] sm:$0xf]  ;;  %vm210_vm0 = vcmask 916480  }
  0x80   :  { %v102_v10 = vpop.permute.xlu1 %101  ;;  %v114_v11 = vpop.permute.xlu0 %113 }
  0x81   :  { %v116_v13 = vsel %vm115_vm1, %v112_v6, %v114_v11  ;;  %v180_v14 = vsel %vm117_vm2, %v108_v9, %v114_v11  ;;  %v172_v17 = vsel %vm117_vm2, %v96_v8, %v102_v10  ;;  %v60_v21 = vpop.permute.xlu2 %59  ;;  %v1121_v6 = vld [vmem:[%s1709_s1 + $0x14] sm:$0xf0]  ;;  %v1037_v9 = vld [vmem:[%s1709_s1 + $0x20] sm:$0xf]  ;;  %vm279_vm1 = vcmask 588800  }
  0x82   :  { %369 = vmatpush.bf16.msra.mxu2 %v180_v14  ;;  %v176_v16 = vsel %vm117_vm2, %v110_v12, %v116_v13  ;;  %v1030_v8 = vor.u32 %v1121_v6, %v1029_v5  ;;  %v1125_v12 = vld [vmem:[%s1709_s1 + $0x34] sm:$0xf0]  ;;  %v1053_v14 = vld [vmem:[%s1709_s1 + $0x40] sm:$0xf] }
  0x83   :  { %301 = vmatpush.bf16.msra.mxu0 %v176_v16 }
  0x86   :  { %370 = vmatpush.bf16.msra.mxu2 %v172_v17 }
  0x88   :  { %v90_v18 = vpop.permute.xlu1 %89  ;;  %v84_v19 = vpop.permute.xlu0 %83 }
  0x89   :  { %v164_v20 = vsel %vm117_vm2, %v84_v19, %v90_v18  ;;  %v76_v28 = vpop.permute.xlu2 %75 }
  0x8a   :  { %371 = vmatpush.bf16.msra.mxu2 %v164_v20  ;;  %v80_v37 = vsel %vm79_vm7, %v76_v28, %v78_v15  ;;  %v1023_v28 = vld [vmem:[%s1709_s1 + $0x8] sm:$0xf0] }
  0x90   :  { %v72_v22 = vpop.permute.xlu1 %71  ;;  %v100_v23 = vpop.permute.xlu0 %99 }
  0x91   :  { %v104_v25 = vsel %vm103_vm4, %v100_v23, %v102_v10  ;;  %208 = vrot.lane.b32.xlu0 %v72_v22, %s1214_s9  ;;  %v156_v26 = vsel %vm117_vm2, %v72_v22, %v78_v15  ;;  %v58_v34 = vpop.permute.xlu2 %57  ;;  %v1123_v10 = vld [vmem:[%s1709_s1 + $0x24] sm:$0xf0] }
  0x92   :  { %v168_v27 = vsel %vm117_vm2, %v98_v24, %v104_v25  ;;  %372 = vmatpush.bf16.msra.mxu2 %v156_v26  ;;  %v62_v47 = vsel %vm61_vm9, %v58_v34, %v60_v21  ;;  %v1038_v11 = vor.u32 %v1123_v10, %v1037_v9  ;;  %v1127_v15 = vld [vmem:[%s1709_s1 + $0x44] sm:$0xf0] }
  0x93   :  { %302 = vmatpush.bf16.msra.mxu0 %v168_v27  ;;  %v1054_v16 = vor.u32 %v1127_v15, %v1053_v14  ;;  %v1118_v27 = vld [vmem:[%s1709_s1 + $0x4] sm:$0xf] }
  0x94   :  { %v1026_v34 = vor.u32 %v1118_v27, %v1023_v28 }
  0x98   :  { %v88_v29 = vpop.permute.xlu1 %87  ;;  %v82_v30 = vpop.permute.xlu0 %81 }
  0x99   :  { %v92_v31 = vsel %vm91_vm5, %v88_v29, %v90_v18  ;;  %v86_v32 = vsel %vm85_vm6, %v82_v30, %v84_v19  ;;  %v42_v41 = vpop.permute.xlu2 %41  ;;  %v1122_v29 = vld [vmem:[%s1709_s1 + $0x24] sm:$0xf]  ;;  %v1039_v30 = vld [vmem:[%s1709_s1 + $0x28] sm:$0xf0] }
  0x9a   :  { %v160_v33 = vsel %vm117_vm2, %v86_v32, %v92_v31 }
  0x9b   :  { %303 = vmatpush.bf16.msra.mxu0 %v160_v33 }
  0xa0   :  { %v70_v35 = vpop.permute.xlu1 %69  ;;  %v66_v36 = vpop.permute.xlu0 %65 }
  0xa1   :  { %v74_v38 = vsel %vm73_vm8, %v70_v35, %v72_v22  ;;  %v148_v39 = vsel %vm117_vm2, %v60_v21, %v66_v36  ;;  %v30_v51 = vpop.permute.xlu2 %29  ;;  %v1042_v35 = vor.u32 %v1122_v29, %v1039_v30 }
  0xa2   :  { %206 = vrot.lane.b32.xlu2 %v74_v38, %s1214_s9  ;;  %204 = vrot.lane.b32.xlu1 %v148_v39, %s1214_s9  ;;  %v152_v40 = vsel %vm117_vm2, %v74_v38, %v80_v37  ;;  %v124_v54 = vsel %vm117_vm2, %v1249_v3, %v30_v51 }
  0xa3   :  { %373 = vmatpush.bf16.msra.mxu2 %v148_v39  ;;  %304 = vmatpush.bf16.msra.mxu0 %v152_v40  ;;  %v1120_v40 = vld [vmem:[%s1709_s1 + $0x14] sm:$0xf] }
  0xa8   :  { %v54_v42 = vpop.permute.xlu1 %53  ;;  %v48_v43 = vpop.permute.xlu0 %47 }
  0xa9   :  { %v140_v44 = vsel %vm117_vm2, %v48_v43, %v54_v42  ;;  %v28_v61 = vpop.permute.xlu2 %27 }
  0xaa   :  { %200 = vrot.lane.b32.xlu0 %v140_v44, %s1214_s9  ;;  %374 = vmatpush.bf16.msra.mxu2 %v140_v44  ;;  %v32_v0 = vsel %vm31_vm13, %v28_v61, %v30_v51 }
  0xab   :  { %v120_v7 = vsel %vm117_vm2, %v1251_v4, %v32_v0  ;;  %v1045_v4 = vld [vmem:[%s1709_s1 + $0x30] sm:$0xf] }
  0xac   :  { %v1046_v13 = vor.u32 %v1125_v12, %v1045_v4 }
  0xb0   :  { %v36_v45 = vpop.permute.xlu1 %35  ;;  %v64_v46 = vpop.permute.xlu0 %63 }
  0xb1   :  { %v68_v48 = vsel %vm67_vm10, %v64_v46, %v66_v36  ;;  %v132_v49 = vsel %vm117_vm2, %v36_v45, %v42_v41  ;;  %v1126_v46 = vld [vmem:[%s1709_s1 + $0x44] sm:$0xf] }
  0xb2   :  { %v144_v50 = vsel %vm117_vm2, %v62_v47, %v68_v48  ;;  %196 = vrot.lane.b32.xlu2 %v132_v49, %s1214_s9  ;;  %375 = vmatpush.bf16.msra.mxu2 %v132_v49  ;;  %v1055_v47 = vld [vmem:[%s1709_s1 + $0x48] sm:$0xf0] }
  0xb3   :  { %202 = vrot.lane.b32.xlu1 %v144_v50, %s1214_s9  ;;  %305 = vmatpush.bf16.msra.mxu0 %v144_v50  ;;  %v1058_v48 = vor.u32 %v1126_v46, %v1055_v47 }
  0xb6   :  { %376 = vmatpush.bf16.msra.mxu2 %v124_v54 }
  0xb8   :  { %v52_v56 = vpop.permute.xlu1 %51  ;;  %v46_v57 = vpop.permute.xlu0 %45 }
  0xb9   :  { %v56_v58 = vsel %vm55_vm11, %v52_v56, %v54_v42  ;;  %v50_v59 = vsel %vm49_vm12, %v46_v57, %v48_v43  ;;  %377 = vmatmul.bf16.vlgmr.msra.gmra.mxu2 %v1022_v55  ;;  %v1124_v42 = vld [vmem:[%s1709_s1 + $0x34] sm:$0xf]  ;;  %v1047_v43 = vld [vmem:[%s1709_s1 + $0x38] sm:$0xf0] }
  0xba   :  { %v136_v60 = vsel %vm117_vm2, %v50_v59, %v56_v58 }
  0xbb   :  { %198 = vrot.lane.b32.xlu0 %v136_v60, %s1214_s9  ;;  %306 = vmatpush.bf16.msra.mxu0 %v136_v60 }
  0xbc   :  { %192 = vrot.lane.b32.xlu1 %v124_v54, %s1214_s9 }
  0xc0   :  { %v40_v62 = vpop.permute.xlu1 %39  ;;  %v34_v63 = vpop.permute.xlu0 %33 }
  0xc1   :  { %v44_v1 = vsel %vm43_vm14, %v40_v62, %v42_v41  ;;  %v38_v2 = vsel %vm37_vm15, %v34_v63, %v36_v45  ;;  %v1031_v41 = vld [vmem:[%s1709_s1 + $0x18] sm:$0xf0]  ;;  %v1050_v45 = vor.u32 %v1124_v42, %v1047_v43 }
  0xc2   :  { %v128_v3 = vsel %vm117_vm2, %v38_v2, %v44_v1  ;;  %v1034_v44 = vor.u32 %v1120_v40, %v1031_v41 }
  0xc3   :  { %194 = vrot.lane.b32.xlu2 %v128_v3, %s1214_s9  ;;  %307 = vmatpush.bf16.msra.mxu0 %v128_v3 }
  0xc4   :  { %190 = vrot.lane.b32.xlu0 %v120_v7, %s1214_s9 }
  0xc7   :  { %308 = vmatpush.bf16.msra.mxu0 %v120_v7 }
  0xc9   :  { %382 = vmatmul.bf16.gmra.mxu2 %v1030_v8 }
  0xca   :  { %309 = vmatmul.bf16.vlgmr.msra.gmra.mxu0 %v1022_v55 }
  0xd9   :  { %387 = vmatmul.bf16.gmra.mxu2 %v1038_v11 }
  0xda   :  { %314 = vmatmul.bf16.gmra.mxu0 %v1030_v8 }
  0xe9   :  { %392 = vmatmul.bf16.gmra.mxu2 %v1046_v13 }
  0xea   :  { %319 = vmatmul.bf16.gmra.mxu0 %v1038_v11 }
  0xf9   :  { %397 = vmatmul.bf16.gmra.mxu2 %v1054_v16 }
  0xfa   :  { %324 = vmatmul.bf16.gmra.mxu0 %v1046_v13 }
  0xfc   :  { %v207_v17 = vpop.permute.xlu2 %206 }
 0x103   :  { %v209_v18 = vpop.permute.xlu0 %208 }
 0x104   :  { %v215_v19 = vsel %vm210_vm0, %v207_v17, %v209_v18  ;;  %v299_v20 = vsel %vm117_vm2, %v209_v18, 0 }
 0x105   :  { %v296_v21 = vsel %vm117_vm2, %v215_v19, 0  ;;  %406 = vmatpush.bf16.msrb.mxu2 %v299_v20  ;;  %1144 = vmatpush.bf16.msra.mxu3 %v299_v20  ;;  %vm437_vm2 = vcmask 392192  }
 0x106   :  { %338 = vmatpush.bf16.msrb.mxu0 %v296_v21  ;;  %1139 = vmatpush.bf16.msra.mxu1 %v296_v21 }
 0x10a   :  { %329 = vmatmul.bf16.gmra.mxu0 %v1054_v16 }
 0x10c   :  { %v197_v24 = vpop.permute.xlu2 %196 }
 0x114   :  { %v205_v22 = vpop.permute.xlu1 %204 }
 0x115   :  { %407 = vmatpush.bf16.msrb.mxu2 %v205_v22  ;;  %1145 = vmatpush.bf16.msra.mxu3 %v205_v22 }
 0x11c   :  { %v201_v23 = vpop.permute.xlu0 %200 }
 0x11d   :  { %408 = vmatpush.bf16.msrb.mxu2 %v201_v23  ;;  %1146 = vmatpush.bf16.msra.mxu3 %v201_v23  ;;  %v195_v36 = vpop.permute.xlu2 %194 }
 0x11e   :  { %v212_v37 = vsel %vm210_vm0, %v195_v36, %v197_v24 }
 0x121   :  { %409 = vmatpush.bf16.msrb.mxu2 %v197_v24  ;;  %1147 = vmatpush.bf16.msra.mxu3 %v197_v24 }
 0x125   :  { %v203_v25 = vpop.permute.xlu1 %202 }
 0x126   :  { %v214_v26 = vsel %vm210_vm0, %v203_v25, %v205_v22 }
 0x127   :  { %339 = vmatpush.bf16.msrb.mxu0 %v214_v26  ;;  %1140 = vmatpush.bf16.msra.mxu1 %v214_v26 }
 0x12d   :  { %v199_v31 = vpop.permute.xlu0 %198 }
 0x12e   :  { %v193_v32 = vpop.permute.xlu1 %192  ;;  %v213_v33 = vsel %vm210_vm0, %v199_v31, %v201_v23 }
 0x12f   :  { %410 = vmatpush.bf16.msrb.mxu2 %v193_v32  ;;  %1148 = vmatpush.bf16.msra.mxu3 %v193_v32 }
 0x130   :  { %340 = vmatpush.bf16.msrb.mxu0 %v213_v33  ;;  %1141 = vmatpush.bf16.msra.mxu1 %v213_v33 }
 0x132   :  { %1064 = vmatmul.msk.bf16.vlgmr.msrb.gmra.mxu2 %vm279_vm1, %v1026_v34  ;;  %1066 = vmatmul.msk.bf16.vlgmr.msra.gmra.mxu3 %vm279_vm1, %v1042_v35 }
 0x134   :  { %341 = vmatpush.bf16.msrb.mxu0 %v212_v37  ;;  %1142 = vmatpush.bf16.msra.mxu1 %v212_v37 }
 0x136   :  { %v191_v38 = vpop.permute.xlu0 %190 }
 0x137   :  { %v211_v39 = vsel %vm210_vm0, %v191_v38, %v193_v32 }
 0x138   :  { %342 = vmatpush.bf16.msrb.mxu0 %v211_v39  ;;  %1143 = vmatpush.bf16.msra.mxu1 %v211_v39 }
 0x13b   :  { %1059 = vmatmul.msk.bf16.vlgmr.msrb.gmra.mxu0 %vm279_vm1, %v1026_v34  ;;  %1061 = vmatmul.msk.bf16.vlgmr.msra.gmra.mxu1 %vm279_vm1, %v1042_v35 }
 0x13c   :  { %v378_v49 = vpop.f32.mrf.mxu2 }
 0x142   :  { %1065 = vmatmul.msk.bf16.gmra.mxu2 %vm279_vm1, %v1034_v44  ;;  %1067 = vmatmul.msk.bf16.gmra.mxu3 %vm279_vm1, %v1050_v45 }
 0x144   :  { %v380_v51 = vpop.f32.mrf.mxu2 }
 0x147   :  { %v310_v50 = vpop.f32.mrf.mxu0 }
 0x14b   :  { %1060 = vmatmul.msk.bf16.gmra.mxu0 %vm279_vm1, %v1034_v44  ;;  %1062 = vmatmul.msk.bf16.gmra.mxu1 %vm279_vm1, %v1050_v45 }
 0x14c   :  { %v383_v53 = vpop.f32.mrf.mxu2 }
 0x14f   :  { %v312_v52 = vpop.f32.mrf.mxu0 }
 0x152   :  { %1068 = vmatmul.msk.bf16.gmra.mxu3 %vm279_vm1, %v1058_v48 }
 0x154   :  { %v1388_v55 = vpop.f32.mrf.mxu2 }
 0x157   :  { %v315_v54 = vpop.f32.mrf.mxu0 }
 0x15b   :  { %1063 = vmatmul.msk.bf16.gmra.mxu1 %vm279_vm1, %v1058_v48 }
 0x15c   :  { %v388_v57 = vpop.f32.mrf.mxu2 }
 0x15f   :  { %v1390_v56 = vpop.f32.mrf.mxu0 }
 0x164   :  { %v390_v59 = vpop.f32.mrf.mxu2 }
 0x167   :  { %v320_v58 = vpop.f32.mrf.mxu0 }
 0x16c   :  { %v393_v61 = vpop.f32.mrf.mxu2 }
 0x16f   :  { %v322_v60 = vpop.f32.mrf.mxu0 }
 0x174   :  { %v395_v63 = vpop.f32.mrf.mxu2 }
 0x177   :  { %v325_v62 = vpop.f32.mrf.mxu0 }
 0x17c   :  { %v398_v1 = vpop.f32.mrf.mxu2 }
 0x17f   :  { %v327_v0 = vpop.f32.mrf.mxu0 }
 0x184   :  { %v1392_v3 = vpop.f32.mrf.mxu2 }
 0x187   :  { %v330_v2 = vpop.f32.mrf.mxu0 }
 0x18f   :  { %v1394_v5 = vpop.f32.mrf.mxu0 }
 0x1b5   :  { %v412_v6 = vpop.f32.mrf.mxu2  ;;  %v422_v7 = vpop.f32.mrf.mxu3 }
 0x1b6   :  { %v1396_v8 = vadd.f32 %v412_v6, %v378_v49  ;;  %v1417_v27 = vadd.f32 %v422_v7, %v388_v57 }
 0x1b8   :  { %v344_v9 = vpop.f32.mrf.mxu0  ;;  %v354_v10 = vpop.f32.mrf.mxu1  ;;  %v438_v4 = vsel %vm437_vm2, %v1396_v8, 0.0  ;;  %v454_v33 = vsel %vm437_vm2, %v1417_v27, 0.0 }
 0x1b9   :  { %v1398_v11 = vadd.f32 %v344_v9, %v310_v50  ;;  %v1421_v29 = vadd.f32 %v354_v10, %v320_v58 }
 0x1bb   :  { %v439_v12 = vadd.f32 %v438_v4, %v1398_v11  ;;  %v455_v35 = vadd.f32 %v454_v33, %v1421_v29 }
 0x1bd   :  { %v414_v13 = vpop.f32.mrf.mxu2  ;;  %v424_v14 = vpop.f32.mrf.mxu3  ;;  %440 = vadd.xlane.f32.xlu1 %v439_v12 }
 0x1be   :  { %v1403_v15 = vadd.f32 %v414_v13, %v380_v51  ;;  %v1405_v16 = vadd.f32 %v424_v14, %v390_v59 }
 0x1c0   :  { %v346_v17 = vpop.f32.mrf.mxu0  ;;  %v356_v18 = vpop.f32.mrf.mxu1  ;;  %v458_v21 = vsel %vm437_vm2, %v1405_v16, 0.0  ;;  %v442_v22 = vsel %vm437_vm2, %v1403_v15, 0.0 }
 0x1c1   :  { %v1407_v19 = vadd.f32 %v346_v17, %v312_v52  ;;  %v1409_v20 = vadd.f32 %v356_v18, %v322_v60 }
 0x1c3   :  { %v459_v23 = vadd.f32 %v458_v21, %v1409_v20  ;;  %v443_v24 = vadd.f32 %v442_v22, %v1407_v19 }
 0x1c5   :  { %v417_v25 = vpop.f32.mrf.mxu2  ;;  %v427_v26 = vpop.f32.mrf.mxu3  ;;  %460 = vadd.xlane.f32.xlu0 %v459_v23  ;;  %444 = vadd.xlane.f32.xlu2 %v443_v24 }
 0x1c6   :  { %v1419_v28 = vadd.f32 %v417_v25, %v383_v53  ;;  %v1431_v38 = vadd.f32 %v427_v26, %v393_v61 }
 0x1c8   :  { %v349_v30 = vpop.f32.mrf.mxu0  ;;  %v359_v31 = vpop.f32.mrf.mxu1  ;;  %v446_v34 = vsel %vm437_vm2, %v1419_v28, 0.0  ;;  %v462_v44 = vsel %vm437_vm2, %v1431_v38, 0.0 }
 0x1c9   :  { %v1423_v32 = vadd.f32 %v349_v30, %v315_v54  ;;  %v1435_v40 = vadd.f32 %v359_v31, %v325_v62 }
 0x1cb   :  { %v447_v36 = vadd.f32 %v446_v34, %v1423_v32  ;;  %v463_v47 = vadd.f32 %v462_v44, %v1435_v40 }
 0x1cd   :  { %v429_v37 = vpop.f32.mrf.mxu3  ;;  %456 = vadd.xlane.f32.xlu2 %v455_v35  ;;  %448 = vadd.xlane.f32.xlu1 %v447_v36  ;;  %v419_v45 = vpop.f32.mrf.mxu2 }
 0x1ce   :  { %v1433_v39 = vadd.f32 %v429_v37, %v395_v63  ;;  %v1446_v50 = vadd.f32 %v419_v45, %v1388_v55 }
 0x1d0   :  { %v361_v41 = vpop.f32.mrf.mxu1  ;;  %v466_v43 = vsel %vm437_vm2, %v1433_v39, 0.0  ;;  %v351_v48 = vpop.f32.mrf.mxu0  ;;  %v450_v57 = vsel %vm437_vm2, %v1446_v50, 0.0 }
 0x1d1   :  { %v1437_v42 = vadd.f32 %v361_v41, %v327_v0  ;;  %v1451_v52 = vadd.f32 %v351_v48, %v1390_v56 }
 0x1d3   :  { %v467_v46 = vadd.f32 %v466_v43, %v1437_v42  ;;  %v451_v59 = vadd.f32 %v450_v57, %v1451_v52 }
 0x1d5   :  { %v432_v49 = vpop.f32.mrf.mxu3  ;;  %468 = vadd.xlane.f32.xlu0 %v467_v46  ;;  %464 = vadd.xlane.f32.xlu2 %v463_v47 }
 0x1d6   :  { %v1448_v51 = vadd.f32 %v432_v49, %v398_v1  ;;  %v1215_v1 = vmov 0  }
 0x1d7   :  { %1166 = vset.pattern.permute.xlu1 %v1215_v1  ;;  %1168 = vset.pattern.permute.xlu0 %v1215_v1 }
 0x1d8   :  { %v364_v53 = vpop.f32.mrf.mxu1  ;;  %v470_v58 = vsel %vm437_vm2, %v1448_v51, 0.0  ;;  %1167 = vset.pattern.permute.xlu2 %v1215_v1 }
 0x1d9   :  { %v1453_v54 = vadd.f32 %v364_v53, %v330_v2 }
 0x1db   :  { %v471_v60 = vadd.f32 %v470_v58, %v1453_v54 }
 0x1dd   :  { %v434_v55 = vpop.f32.mrf.mxu3  ;;  %452 = vadd.xlane.f32.xlu2 %v451_v59  ;;  %472 = vadd.xlane.f32.xlu1 %v471_v60 }
 0x1de   :  { %v1462_v61 = vadd.f32 %v434_v55, %v1392_v3 }
 0x1e0   :  { %v366_v56 = vpop.f32.mrf.mxu1  ;;  %v474_v63 = vsel %vm437_vm2, %v1462_v61, 0.0 }
 0x1e1   :  { %v1465_v62 = vadd.f32 %v366_v56, %v1394_v5 }
 0x1e3   :  { %v475_v0 = vadd.f32 %v474_v63, %v1465_v62 }
 0x1e5   :  { %476 = vadd.xlane.f32.xlu0 %v475_v0 }
 0x230   :  { %v441_v2 = vpop.xlane.xlu1 %440 }
 0x238   :  { %v461_v6 = vpop.xlane.xlu0 %460  ;;  %v445_v7 = vpop.xlane.xlu2 %444 }
 0x239   :  { %v478_v9 = vadd.f32 %v461_v6, %v441_v2 }
 0x23b   :  { %v483_v3 = vmul.f32 0.0028409092, %v478_v9 }
 0x23d   :  { %490 = vperm.xlu1 %1166, %v483_v3  }
 0x240   :  { %v457_v10 = vpop.xlane.xlu2 %456  ;;  %v449_v4 = vpop.xlane.xlu1 %448 }
 0x248   :  { %v469_v5 = vpop.xlane.xlu0 %468  ;;  %v465_v12 = vpop.xlane.xlu2 %464 }
 0x249   :  { %v480_v13 = vadd.f32 %v469_v5, %v449_v4  ;;  %v479_v14 = vadd.f32 %v465_v12, %v445_v7 }
 0x24b   :  { %v485_v17 = vmul.f32 0.0028409092, %v480_v13  ;;  %v484_v18 = vmul.f32 0.0028409092, %v479_v14 }
 0x24d   :  { %495 = vperm.xlu2 %1167, %v484_v18   ;;  %500 = vperm.xlu0 %1168, %v485_v17  }
 0x250   :  { %v453_v21 = vpop.xlane.xlu2 %452  ;;  %v473_v22 = vpop.xlane.xlu1 %472 }
 0x251   :  { %v481_v23 = vadd.f32 %v473_v22, %v453_v21 }
 0x253   :  { %v486_v24 = vmul.f32 0.0028409092, %v481_v23 }
 0x255   :  { %505 = vperm.xlu1 %1166, %v486_v24  }
 0x258   :  { %v477_v25 = vpop.xlane.xlu0 %476 }
 0x259   :  { %v482_v26 = vadd.f32 %v477_v25, %v457_v10 }
 0x25b   :  { %v487_v30 = vmul.f32 0.0028409092, %v482_v26 }
 0x25d   :  { %510 = vperm.xlu2 %1167, %v487_v30  }
 0x2a7   :  { %v496_v31 = vpop.permute.xlu2 %495 }
 0x2a8   :  { %v1471_v33 = vsub.f32 %v1403_v15, %v496_v31  ;;  %v1474_v34 = vsub.f32 %v1407_v19, %v496_v31  ;;  %v1494_v46 = vsub.f32 %v1431_v38, %v496_v31  ;;  %v1507_v38 = vsub.f32 %v1435_v40, %v496_v31 }
 0x2aa   :  { %v535_v35 = vmul.f32 %v1474_v34, %v1474_v34  ;;  %v536_v36 = vmul.f32 %v1471_v33, %v1471_v33  ;;  %v546_v57 = vmul.f32 %v1494_v46, %v1494_v46  ;;  %v545_v58 = vmul.f32 %v1507_v38, %v1507_v38 }
 0x2ac   :  { %v557_v37 = vsel %vm437_vm2, %v536_v36, 0.0  ;;  %v577_v59 = vsel %vm437_vm2, %v546_v57, 0.0  ;;  %v670_v36 = vld [vmem:[%s1710_s3 + $0x10] sm:$0xff] }
 0x2ad   :  { %v558_v41 = vadd.f32 %v557_v37, %v535_v35  ;;  %v578_v60 = vadd.f32 %v577_v59, %v545_v58  ;;  %v672_v37 = vld [vmem:[%s1710_s3 + $0x20] sm:$0xff] }
 0x2af   :  { %559 = vadd.xlane.f32.xlu2 %v558_v41  ;;  %v491_v43 = vpop.permute.xlu1 %490 }
 0x2b0   :  { %v1482_v44 = vsub.f32 %v1396_v8, %v491_v43  ;;  %v1485_v15 = vsub.f32 %v1405_v16, %v491_v43  ;;  %v1488_v19 = vsub.f32 %v1409_v20, %v491_v43  ;;  %v1491_v45 = vsub.f32 %v1398_v11, %v491_v43 }
 0x2b2   :  { %v543_v47 = vmul.f32 %v1488_v19, %v1488_v19  ;;  %v544_v48 = vmul.f32 %v1485_v15, %v1485_v15  ;;  %v533_v8 = vmul.f32 %v1491_v45, %v1491_v45  ;;  %v534_v16 = vmul.f32 %v1482_v44, %v1482_v44 }
 0x2b4   :  { %v573_v20 = vsel %vm437_vm2, %v544_v48, 0.0  ;;  %v553_v11 = vsel %vm437_vm2, %v534_v16, 0.0 }
 0x2b5   :  { %v574_v49 = vadd.f32 %v573_v20, %v543_v47  ;;  %v554_v53 = vadd.f32 %v553_v11, %v533_v8 }
 0x2b7   :  { %575 = vadd.xlane.f32.xlu0 %v574_v49  ;;  %555 = vadd.xlane.f32.xlu1 %v554_v53 }
 0x2bf   :  { %v501_v55 = vpop.permute.xlu0 %500  ;;  %579 = vadd.xlane.f32.xlu1 %v578_v60 }
 0x2c0   :  { %v1515_v56 = vsub.f32 %v1419_v28, %v501_v55  ;;  %v1518_v63 = vsub.f32 %v1423_v32, %v501_v55  ;;  %v1521_v40 = vsub.f32 %v1433_v39, %v501_v55  ;;  %v1529_v7 = vsub.f32 %v1437_v42, %v501_v55  ;;  %v511_v32 = vpop.permute.xlu2 %510 }
 0x2c1   :  { %v1546_v42 = vsub.f32 %v1462_v61, %v511_v32  ;;  %v1560_v61 = vsub.f32 %v1417_v27, %v511_v32  ;;  %v1565_v22 = vsub.f32 %v1465_v62, %v511_v32  ;;  %v1570_v24 = vsub.f32 %v1421_v29, %v511_v32  ;;  %v668_v29 = vld [vmem:[%s1710_s3] sm:$0xff] }
 0x2c2   :  { %v537_v0 = vmul.f32 %v1518_v63, %v1518_v63  ;;  %v538_v1 = vmul.f32 %v1515_v56, %v1515_v56  ;;  %v548_v28 = vmul.f32 %v1521_v40, %v1521_v40  ;;  %v547_v5 = vmul.f32 %v1529_v7, %v1529_v7 }
 0x2c3   :  { %v552_v23 = vmul.f32 %v1546_v42, %v1546_v42  ;;  %v542_v27 = vmul.f32 %v1560_v61, %v1560_v61  ;;  %v551_v25 = vmul.f32 %v1565_v22, %v1565_v22  ;;  %v541_v62 = vmul.f32 %v1570_v24, %v1570_v24 }
 0x2c4   :  { %v561_v2 = vsel %vm437_vm2, %v538_v1, 0.0  ;;  %v581_v12 = vsel %vm437_vm2, %v548_v28, 0.0 }
 0x2c5   :  { %v562_v6 = vadd.f32 %v561_v2, %v537_v0  ;;  %v582_v17 = vadd.f32 %v581_v12, %v547_v5  ;;  %v589_v26 = vsel %vm437_vm2, %v552_v23, 0.0  ;;  %v569_v30 = vsel %vm437_vm2, %v542_v27, 0.0 }
 0x2c6   :  { %v590_v31 = vadd.f32 %v589_v26, %v551_v25  ;;  %v570_v35 = vadd.f32 %v569_v30, %v541_v62  ;;  %v604_v25 = vld [vmem:[%s1711_s2 + $0x8] sm:$0xff]  ;;  %v1134_v62 = vld [vmem:[%s1712_s4 + $0x30] sm:$0xff] }
 0x2c7   :  { %563 = vadd.xlane.f32.xlu2 %v562_v6  ;;  %v506_v9 = vpop.permute.xlu1 %505  ;;  %v603_v6 = vld [vmem:[%s1711_s2] sm:$0xff] }
 0x2c8   :  { %v1534_v39 = vsub.f32 %v1446_v50, %v506_v9  ;;  %v1537_v3 = vsub.f32 %v1448_v51, %v506_v9  ;;  %v1540_v10 = vsub.f32 %v1453_v54, %v506_v9  ;;  %v1543_v4 = vsub.f32 %v1451_v52, %v506_v9 }
 0x2ca   :  { %v549_v50 = vmul.f32 %v1540_v10, %v1540_v10  ;;  %v550_v51 = vmul.f32 %v1537_v3, %v1537_v3  ;;  %v539_v54 = vmul.f32 %v1543_v4, %v1543_v4  ;;  %v540_v52 = vmul.f32 %v1534_v39, %v1534_v39 }
 0x2cc   :  { %v585_v13 = vsel %vm437_vm2, %v550_v51, 0.0  ;;  %v565_v14 = vsel %vm437_vm2, %v540_v52, 0.0 }
 0x2cd   :  { %v586_v18 = vadd.f32 %v585_v13, %v549_v50  ;;  %v566_v21 = vadd.f32 %v565_v14, %v539_v54 }
 0x2cf   :  { %583 = vadd.xlane.f32.xlu2 %v582_v17  ;;  %587 = vadd.xlane.f32.xlu0 %v586_v18 }
 0x2d0   :  { %567 = vadd.xlane.f32.xlu1 %v566_v21  ;;  %v1135_v21 = vld [vmem:[%s1712_s4 + $0x38] sm:$0xff] }
 0x2d1   :  { %896 = vmatpush.bf16.msrb.mxu1 %v1135_v21  ;;  %v1131_v21 = vld [vmem:[%s1712_s4 + $0x18] sm:$0xff] }
 0x2d5   :  { %897 = vmatpush.bf16.msrb.mxu1 %v1134_v62  ;;  %v1128_v62 = vld [vmem:[%s1712_s4] sm:$0xff] }
 0x2d7   :  { %591 = vadd.xlane.f32.xlu2 %v590_v31  ;;  %v669_v31 = vld [vmem:[%s1710_s3 + $0x8] sm:$0xff] }
 0x2d8   :  { %571 = vadd.xlane.f32.xlu1 %v570_v35 }
 0x2ef   :  { %720 = vperm.xlu2 %1167, %v668_v29  }
 0x2f7   :  { %730 = vperm.xlu2 %1167, %v670_v36  }
 0x2ff   :  { %740 = vperm.xlu2 %1167, %v672_v37  }
 0x322   :  { %v560_v16 = vpop.xlane.xlu2 %559 }
 0x32a   :  { %v576_v41 = vpop.xlane.xlu0 %575  ;;  %v556_v43 = vpop.xlane.xlu1 %555 }
 0x32b   :  { %v593_v47 = vadd.f32 %v576_v41, %v556_v43  ;;  %v1133_v41 = vld [vmem:[%s1712_s4 + $0x28] sm:$0xff] }
 0x32c   :  { %898 = vmatpush.bf16.msrb.mxu1 %v1133_v41 }
 0x32d   :  { %v598_v48 = vmul.f32 0.0028409092, %v593_v47 }
 0x32f   :  { %v608_v8 = vadd.f32 1e-05, %v598_v48 }
 0x331   :  { %1169 = vrsqrt.f32 %v608_v8  ;;  %vm619_vm4 = vweird.f32 %v608_v8 }
 0x332   :  { %v580_v20 = vpop.xlane.xlu1 %579 }
 0x333   :  { %v594_v11 = vadd.f32 %v580_v20, %v560_v16  ;;  %v1132_v20 = vld [vmem:[%s1712_s4 + $0x20] sm:$0xff] }
 0x334   :  { %899 = vmatpush.bf16.msrb.mxu1 %v1132_v20 }
 0x335   :  { %v599_v49 = vmul.f32 0.0028409092, %v594_v11 }
 0x337   :  { %v1170_v53 = vpop.eup %1169  ;;  %v609_v57 = vadd.f32 1e-05, %v599_v49 }
 0x338   :  { %v614_v58 = vmul.f32 %v1170_v53, %v608_v8  ;;  %vm620_vm3 = vweird.f32 %v1170_v53  ;;  %900 = vmatpush.bf16.msrb.mxu1 %v1131_v21 }
 0x339   :  { %1171 = vrsqrt.f32 %v609_v57  ;;  %vm621_vm5 = vmor %vm619_vm4, %vm620_vm3  ;;  %vm629_vm7 = vweird.f32 %v609_v57  ;;  %vm1004_vm3 = vcmask 15360  }
 0x33a   :  { %v615_v59 = vmul.f32 %v1170_v53, %v614_v58  ;;  %v564_v60 = vpop.xlane.xlu2 %563 }
 0x33c   :  { %v616_v55 = vmul.f32 0.5, %v615_v59 }
 0x33e   :  { %v617_v0 = vsub.f32 1.5, %v616_v55 }
 0x33f   :  { %v1172_v1 = vpop.eup %1171 }
 0x340   :  { %v624_v2 = vmul.f32 %v1172_v1, %v609_v57  ;;  %v618_v28 = vmul.f32 %v1170_v53, %v617_v0  ;;  %vm630_vm6 = vweird.f32 %v1172_v1  ;;  %v605_v0 = vld [vmem:[%s1711_s2 + $0x10] sm:$0xff] }
 0x341   :  { %vm631_vm8 = vmor %vm629_vm7, %vm630_vm6 }
 0x342   :  { %v625_v32 = vmul.f32 %v1172_v1, %v624_v2  ;;  %v584_v9 = vpop.xlane.xlu2 %583  ;;  %v588_v5 = vpop.xlane.xlu0 %587  ;;  %v622_v12 = vsel %vm621_vm5, %v1170_v53, %v618_v28 }
 0x343   :  { %v595_v50 = vadd.f32 %v584_v9, %v564_v60  ;;  %v568_v51 = vpop.xlane.xlu1 %567  ;;  %v663_v54 = vmul.f32 %v622_v12, %v603_v6  ;;  %v606_v6 = vld [vmem:[%s1711_s2 + $0x18] sm:$0xff] }
 0x344   :  { %v626_v52 = vmul.f32 0.5, %v625_v32  ;;  %v596_v13 = vadd.f32 %v588_v5, %v568_v51 }
 0x345   :  { %v600_v14 = vmul.f32 0.0028409092, %v595_v50  ;;  %675 = vperm.xlu0 %1168, %v663_v54  }
 0x346   :  { %v627_v17 = vsub.f32 1.5, %v626_v52  ;;  %v601_v18 = vmul.f32 0.0028409092, %v596_v13  ;;  %v607_v52 = vld [vmem:[%s1711_s2 + $0x20] sm:$0xff] }
 0x347   :  { %v610_v23 = vadd.f32 1e-05, %v600_v14  ;;  %v671_v14 = vld [vmem:[%s1710_s3 + $0x18] sm:$0xff] }
 0x348   :  { %v611_v27 = vadd.f32 1e-05, %v601_v18  ;;  %v628_v26 = vmul.f32 %v1172_v1, %v627_v17 }
 0x349   :  { %1173 = vrsqrt.f32 %v610_v23  ;;  %vm639_vm11 = vweird.f32 %v610_v23 }
 0x34a   :  { %1175 = vrsqrt.f32 %v611_v27  ;;  %v592_v30 = vpop.xlane.xlu2 %591  ;;  %v632_v35 = vsel %vm631_vm8, %v1172_v1, %v628_v26  ;;  %vm649_vm13 = vweird.f32 %v611_v27  ;;  %v1137_v26 = vld [vmem:[%s1712_s4 + $0x48] sm:$0xff] }
 0x34b   :  { %v572_v29 = vpop.xlane.xlu1 %571  ;;  %v664_v36 = vmul.f32 %v632_v35, %v604_v25  ;;  %v1129_v25 = vld [vmem:[%s1712_s4 + $0x8] sm:$0xff] }
 0x34c   :  { %v597_v37 = vadd.f32 %v592_v30, %v572_v29  ;;  %v1136_v30 = vld [vmem:[%s1712_s4 + $0x40] sm:$0xff] }
 0x34d   :  { %725 = vperm.xlu0 %1168, %v669_v31   ;;  %680 = vperm.xlu1 %1166, %v664_v36  }
 0x34e   :  { %v602_v43 = vmul.f32 0.0028409092, %v597_v37 }
 0x34f   :  { %v1174_v47 = vpop.eup %1173 }
 0x350   :  { %v1176_v48 = vpop.eup %1175  ;;  %v634_v8 = vmul.f32 %v1174_v47, %v610_v23  ;;  %v612_v16 = vadd.f32 1e-05, %v602_v43  ;;  %vm640_vm9 = vweird.f32 %v1174_v47  ;;  %v1130_v23 = vld [vmem:[%s1712_s4 + $0x10] sm:$0xff] }
 0x351   :  { %v644_v11 = vmul.f32 %v1176_v48, %v611_v27  ;;  %vm650_vm10 = vweird.f32 %v1176_v48  ;;  %vm641_vm12 = vmor %vm639_vm11, %vm640_vm9  ;;  %v1138_v27 = vld [vmem:[%s1712_s4 + $0x50] sm:$0xff]  ;;  %901 = vmatpush.bf16.msrb.mxu1 %v1130_v23 }
 0x352   :  { %v635_v49 = vmul.f32 %v1174_v47, %v634_v8  ;;  %1177 = vrsqrt.f32 %v612_v16  ;;  %vm651_vm14 = vmor %vm649_vm13, %vm650_vm10  ;;  %vm659_vm0 = vweird.f32 %v612_v16  ;;  %935 = vmatpush.bf16.msrb.mxu3 %v1138_v27  ;;  %v721_v36 = vpop.permute.xlu2 %720 }
 0x353   :  { %v645_v53 = vmul.f32 %v1176_v48, %v644_v11 }
 0x354   :  { %v636_v57 = vmul.f32 0.5, %v635_v49 }
 0x355   :  { %v646_v58 = vmul.f32 0.5, %v645_v53  ;;  %902 = vmatpush.bf16.msrb.mxu1 %v1129_v25 }
 0x356   :  { %v637_v59 = vsub.f32 1.5, %v636_v57  ;;  %936 = vmatpush.bf16.msrb.mxu3 %v1137_v26 }
 0x357   :  { %v647_v60 = vsub.f32 1.5, %v646_v58 }
 0x358   :  { %v1178_v55 = vpop.eup %1177  ;;  %v638_v1 = vmul.f32 %v1174_v47, %v637_v59 }
 0x359   :  { %v654_v2 = vmul.f32 %v1178_v55, %v612_v16  ;;  %v648_v28 = vmul.f32 %v1176_v48, %v647_v60  ;;  %vm660_vm15 = vweird.f32 %v1178_v55  ;;  %903 = vmatpush.bf16.msrb.mxu1 %v1128_v62 }
 0x35a   :  { %v642_v32 = vsel %vm641_vm12, %v1174_v47, %v638_v1  ;;  %vm661_vm1 = vmor %vm659_vm0, %vm660_vm15  ;;  %937 = vmatpush.bf16.msrb.mxu3 %v1136_v30 }
 0x35b   :  { %v655_v9 = vmul.f32 %v1178_v55, %v654_v2  ;;  %v665_v5 = vmul.f32 %v642_v32, %v605_v0  ;;  %v652_v12 = vsel %vm651_vm14, %v1176_v48, %v648_v28 }
 0x35c   :  { %v666_v50 = vmul.f32 %v652_v12, %v606_v6 }
 0x35d   :  { %v656_v51 = vmul.f32 0.5, %v655_v9  ;;  %685 = vperm.xlu1 %1166, %v665_v5  }
 0x35e   :  { %690 = vperm.xlu0 %1168, %v666_v50  }
 0x35f   :  { %v657_v54 = vsub.f32 1.5, %v656_v51 }
 0x361   :  { %v658_v13 = vmul.f32 %v1178_v55, %v657_v54 }
 0x363   :  { %v662_v17 = vsel %vm661_vm1, %v1178_v55, %v658_v13 }
 0x364   :  { %v667_v18 = vmul.f32 %v662_v17, %v607_v52 }
 0x365   :  { %735 = vperm.xlu1 %1166, %v671_v14  }
 0x366   :  { %695 = vperm.xlu0 %1168, %v667_v18  }
 0x3b7   :  { %v676_v31 = vpop.permute.xlu0 %675 }
 0x3b8   :  { %v698_v35 = vmul.f32 %v676_v31, %v1491_v45  ;;  %v699_v29 = vmul.f32 %v676_v31, %v1482_v44  ;;  %v709_v52 = vmul.f32 %v676_v31, %v1485_v15 }
 0x3ba   :  { %v744_v41 = vadd.f32 %v721_v36, %v699_v29  ;;  %v743_v48 = vadd.f32 %v721_v36, %v698_v35  ;;  %v754_v21 = vadd.f32 %v721_v36, %v709_v52 }
 0x3bc   :  { %v764_v11 = vmul.f32 %v744_v41, %v744_v41  ;;  %v763_v53 = vmul.f32 %v743_v48, %v743_v48  ;;  %v774_v26 = vmul.f32 %v754_v21, %v754_v21 }
 0x3bf   :  { %v681_v37 = vpop.permute.xlu1 %680  ;;  %v726_v8 = vpop.permute.xlu0 %725 }
 0x3c0   :  { %v700_v43 = vmul.f32 %v681_v37, %v1474_v34  ;;  %v701_v47 = vmul.f32 %v681_v37, %v1471_v33  ;;  %v731_v33 = vpop.permute.xlu2 %730  ;;  %v710_v15 = vmul.f32 %v681_v37, %v1507_v38 }
 0x3c2   :  { %v746_v16 = vadd.f32 %v726_v8, %v701_v47  ;;  %v745_v20 = vadd.f32 %v726_v8, %v700_v43  ;;  %v755_v29 = vadd.f32 %v726_v8, %v710_v15 }
 0x3c4   :  { %v766_v49 = vmul.f32 %v746_v16, %v746_v16  ;;  %v765_v57 = vmul.f32 %v745_v20, %v745_v20  ;;  %v775_v47 = vmul.f32 %v755_v29, %v755_v29 }
 0x3c6   :  { %v783_v58 = vpack.c.bf16 %v765_v57, %v763_v53  ;;  %v784_v59 = vpack.c.bf16 %v766_v49, %v764_v11 }
 0x3c8   :  { %904 = vmatmul.bf16.vlgmr.msrb.gmra.mxu1 %v783_v58  ;;  %1113 = vmatmul.msk.bf16.vlgmr.msrb.gmra.mxu3 %vm437_vm2, %v784_v59  ;;  %v741_v13 = vpop.permute.xlu2 %740 }
 0x3cf   :  { %v686_v44 = vpop.permute.xlu1 %685 }
 0x3d0   :  { %v702_v45 = vmul.f32 %v686_v44, %v1518_v63  ;;  %v703_v34 = vmul.f32 %v686_v44, %v1515_v56  ;;  %v691_v60 = vpop.permute.xlu0 %690 }
 0x3d1   :  { %v704_v55 = vmul.f32 %v691_v60, %v1543_v4  ;;  %v705_v0 = vmul.f32 %v691_v60, %v1534_v39  ;;  %v708_v39 = vmul.f32 %v676_v31, %v1488_v19  ;;  %v713_v19 = vmul.f32 %v686_v44, %v1521_v40 }
 0x3d2   :  { %v747_v1 = vadd.f32 %v731_v33, %v702_v45  ;;  %v748_v2 = vadd.f32 %v731_v33, %v703_v34 }
 0x3d3   :  { %v753_v18 = vadd.f32 %v721_v36, %v708_v39  ;;  %v758_v35 = vadd.f32 %v731_v33, %v713_v19 }
 0x3d4   :  { %v767_v5 = vmul.f32 %v747_v1, %v747_v1  ;;  %v768_v50 = vmul.f32 %v748_v2, %v748_v2 }
 0x3d5   :  { %v773_v25 = vmul.f32 %v753_v18, %v753_v18  ;;  %v778_v43 = vmul.f32 %v758_v35, %v758_v35 }
 0x3d7   :  { %v736_v6 = vpop.permute.xlu1 %735 }
 0x3d8   :  { %v749_v28 = vadd.f32 %v736_v6, %v704_v55  ;;  %v750_v32 = vadd.f32 %v736_v6, %v705_v0  ;;  %v696_v63 = vpop.permute.xlu0 %695 }
 0x3d9   :  { %v706_v56 = vmul.f32 %v696_v63, %v1570_v24  ;;  %v707_v4 = vmul.f32 %v696_v63, %v1560_v61  ;;  %v712_v61 = vmul.f32 %v686_v44, %v1529_v7  ;;  %v711_v24 = vmul.f32 %v681_v37, %v1494_v46 }
 0x3da   :  { %v770_v9 = vmul.f32 %v750_v32, %v750_v32  ;;  %v769_v12 = vmul.f32 %v749_v28, %v749_v28  ;;  %v716_v7 = vmul.f32 %v696_v63, %v1565_v22  ;;  %v717_v40 = vmul.f32 %v696_v63, %v1546_v42 }
 0x3db   :  { %v752_v14 = vadd.f32 %v741_v13, %v707_v4  ;;  %v751_v17 = vadd.f32 %v741_v13, %v706_v56  ;;  %v757_v31 = vadd.f32 %v731_v33, %v712_v61  ;;  %v756_v36 = vadd.f32 %v726_v8, %v711_v24 }
 0x3dc   :  { %v785_v51 = vpack.c.bf16 %v769_v12, %v767_v5  ;;  %v786_v54 = vpack.c.bf16 %v770_v9, %v768_v50  ;;  %v762_v38 = vadd.f32 %v741_v13, %v717_v40  ;;  %v714_v46 = vmul.f32 %v691_v60, %v1540_v10 }
 0x3dd   :  { %v771_v23 = vmul.f32 %v751_v17, %v751_v17  ;;  %v772_v27 = vmul.f32 %v752_v14, %v752_v14  ;;  %v777_v41 = vmul.f32 %v757_v31, %v757_v31  ;;  %v776_v48 = vmul.f32 %v756_v36, %v756_v36 }
 0x3de   :  { %909 = vmatmul.bf16.gmra.mxu1 %v785_v51  ;;  %1114 = vmatmul.msk.bf16.gmra.mxu3 %vm437_vm2, %v786_v54  ;;  %v715_v37 = vmul.f32 %v691_v60, %v1537_v3  ;;  %v761_v11 = vadd.f32 %v741_v13, %v716_v7  ;;  %v759_v8 = vadd.f32 %v736_v6, %v714_v46 }
 0x3df   :  { %v787_v62 = vpack.c.bf16 %v773_v25, %v771_v23  ;;  %v788_v30 = vpack.c.bf16 %v774_v26, %v772_v27  ;;  %v789_v16 = vpack.c.bf16 %v777_v41, %v775_v47  ;;  %v790_v20 = vpack.c.bf16 %v778_v43, %v776_v48 }
 0x3e0   :  { %v760_v49 = vadd.f32 %v736_v6, %v715_v37  ;;  %v781_v53 = vmul.f32 %v761_v11, %v761_v11  ;;  %v782_v57 = vmul.f32 %v762_v38, %v762_v38  ;;  %v779_v59 = vmul.f32 %v759_v8, %v759_v8 }
 0x3e2   :  { %v780_v58 = vmul.f32 %v760_v49, %v760_v49  ;;  %v791_v44 = vpack.c.bf16 %v781_v53, %v779_v59 }
 0x3e4   :  { %v792_v45 = vpack.c.bf16 %v782_v57, %v780_v58 }
 0x3ee   :  { %914 = vmatmul.bf16.gmra.mxu1 %v787_v62  ;;  %1115 = vmatmul.msk.bf16.gmra.mxu3 %vm437_vm2, %v788_v30 }
 0x3fe   :  { %919 = vmatmul.bf16.gmra.mxu1 %v789_v16  ;;  %1116 = vmatmul.msk.bf16.gmra.mxu3 %vm437_vm2, %v790_v20 }
 0x40e   :  { %924 = vmatmul.bf16.gmra.mxu1 %v791_v44  ;;  %1117 = vmatmul.msk.bf16.gmra.mxu3 %vm437_vm2, %v792_v45 }
 0x445   :  { %v905_v22 = vpop.f32.mrf.mxu1 }
 0x44b   :  { %v939_v34 = vpop.f32.mrf.mxu3 }
 0x44c   :  { %v940_v42 = vadd.f32 %v939_v34, %v905_v22 }
 0x44d   :  { %v907_v10 = vpop.f32.mrf.mxu1 }
 0x44e   :  { %v964_v33 = vmul.f32 0.006666667, %v940_v42 }
 0x450   :  { %v974_v55 = vmax.f32 %v964_v33, 1e-06 }
 0x452   :  { %1179 = vlog2.f32 %v974_v55 }
 0x453   :  { %v941_v3 = vpop.f32.mrf.mxu3 }
 0x454   :  { %v942_v60 = vadd.f32 %v941_v3, %v907_v10 }
 0x456   :  { %v965_v0 = vmul.f32 0.006666667, %v942_v60 }
 0x458   :  { %v1180_v1 = vpop.eup %1179  ;;  %v975_v2 = vmax.f32 %v965_v0, 1e-06 }
 0x459   :  { %v985_v6 = vmul.f32 0.6931472, %v1180_v1 }
 0x45a   :  { %1181 = vlog2.f32 %v975_v2 }
 0x45b   :  { %1005 = vst.msk [vmem:[%s1713_s5] sm:$0xff] %vm1004_vm3, %v985_v6  ;;  %v910_v28 = vpop.f32.mrf.mxu1 }
 0x460   :  { %v1182_v32 = vpop.eup %1181 }
 0x461   :  { %v987_v9 = vmul.f32 0.6931472, %v1182_v32  ;;  %v944_v5 = vpop.f32.mrf.mxu3 }
 0x462   :  { %v945_v12 = vadd.f32 %v944_v5, %v910_v28 }
 0x463   :  { %1006 = vst.msk [vmem:[%s1713_s5 + $0x8] sm:$0xff] %vm1004_vm3, %v987_v9  ;;  %v912_v50 = vpop.f32.mrf.mxu1 }
 0x464   :  { %v966_v51 = vmul.f32 0.006666667, %v945_v12 }
 0x466   :  { %v976_v54 = vmax.f32 %v966_v51, 1e-06 }
 0x468   :  { %1183 = vlog2.f32 %v976_v54 }
 0x469   :  { %v946_v63 = vpop.f32.mrf.mxu3 }
 0x46a   :  { %v947_v56 = vadd.f32 %v946_v63, %v912_v50 }
 0x46b   :  { %v915_v4 = vpop.f32.mrf.mxu1 }
 0x46c   :  { %v967_v39 = vmul.f32 0.006666667, %v947_v56 }
 0x46e   :  { %v1184_v52 = vpop.eup %1183  ;;  %v977_v13 = vmax.f32 %v967_v39, 1e-06 }
 0x46f   :  { %v989_v14 = vmul.f32 0.6931472, %v1184_v52 }
 0x470   :  { %1185 = vlog2.f32 %v977_v13 }
 0x471   :  { %1007 = vst.msk [vmem:[%s1713_s5 + $0x10] sm:$0xff] %vm1004_vm3, %v989_v14  ;;  %v949_v17 = vpop.f32.mrf.mxu3 }
 0x472   :  { %v950_v18 = vadd.f32 %v949_v17, %v915_v4 }
 0x473   :  { %v917_v21 = vpop.f32.mrf.mxu1 }
 0x474   :  { %v968_v23 = vmul.f32 0.006666667, %v950_v18 }
 0x476   :  { %v1186_v27 = vpop.eup %1185  ;;  %v978_v25 = vmax.f32 %v968_v23, 1e-06 }
 0x477   :  { %v991_v26 = vmul.f32 0.6931472, %v1186_v27 }
 0x478   :  { %1187 = vlog2.f32 %v978_v25 }
 0x479   :  { %1008 = vst.msk [vmem:[%s1713_s5 + $0x18] sm:$0xff] %vm1004_vm3, %v991_v26  ;;  %v951_v62 = vpop.f32.mrf.mxu3 }
 0x47a   :  { %v952_v30 = vadd.f32 %v951_v62, %v917_v21 }
 0x47b   :  { %v920_v61 = vpop.f32.mrf.mxu1 }
 0x47c   :  { %v969_v19 = vmul.f32 0.006666667, %v952_v30 }
 0x47e   :  { %v1188_v15 = vpop.eup %1187  ;;  %v979_v24 = vmax.f32 %v969_v19, 1e-06 }
 0x47f   :  { %v993_v31 = vmul.f32 0.6931472, %v1188_v15 }
 0x480   :  { %1189 = vlog2.f32 %v979_v24 }
 0x481   :  { %1009 = vst.msk [vmem:[%s1713_s5 + $0x20] sm:$0xff] %vm1004_vm3, %v993_v31  ;;  %v954_v35 = vpop.f32.mrf.mxu3 }
 0x482   :  { %v955_v29 = vadd.f32 %v954_v35, %v920_v61 }
 0x483   :  { %v922_v41 = vpop.f32.mrf.mxu1 }
 0x484   :  { %v970_v36 = vmul.f32 0.006666667, %v955_v29 }
 0x486   :  { %v1190_v43 = vpop.eup %1189  ;;  %v980_v47 = vmax.f32 %v970_v36, 1e-06 }
 0x487   :  { %v995_v48 = vmul.f32 0.6931472, %v1190_v43 }
 0x488   :  { %1191 = vlog2.f32 %v980_v47 }
 0x489   :  { %1010 = vst.msk [vmem:[%s1713_s5 + $0x28] sm:$0xff] %vm1004_vm3, %v995_v48  ;;  %v956_v16 = vpop.f32.mrf.mxu3 }
 0x48a   :  { %v957_v20 = vadd.f32 %v956_v16, %v922_v41 }
 0x48b   :  { %v925_v37 = vpop.f32.mrf.mxu1 }
 0x48c   :  { %v971_v7 = vmul.f32 0.006666667, %v957_v20 }
 0x48e   :  { %v1192_v40 = vpop.eup %1191  ;;  %v981_v38 = vmax.f32 %v971_v7, 1e-06 }
 0x48f   :  { %v997_v46 = vmul.f32 0.6931472, %v1192_v40 }
 0x490   :  { %1193 = vlog2.f32 %v981_v38 }
 0x491   :  { %1011 = vst.msk [vmem:[%s1713_s5 + $0x30] sm:$0xff] %vm1004_vm3, %v997_v46  ;;  %v959_v11 = vpop.f32.mrf.mxu3 }
 0x492   :  { %v960_v8 = vadd.f32 %v959_v11, %v925_v37 }
 0x493   :  { %v927_v59 = vpop.f32.mrf.mxu1 }
 0x494   :  { %v972_v49 = vmul.f32 0.006666667, %v960_v8 }
 0x496   :  { %v1194_v53 = vpop.eup %1193  ;;  %v982_v57 = vmax.f32 %v972_v49, 1e-06 }
 0x497   :  { %v999_v58 = vmul.f32 0.6931472, %v1194_v53 }
 0x498   :  { %1195 = vlog2.f32 %v982_v57 }
 0x499   :  { %1012 = vst.msk [vmem:[%s1713_s5 + $0x38] sm:$0xff] %vm1004_vm3, %v999_v58  ;;  %v961_v44 = vpop.f32.mrf.mxu3 }
 0x49a   :  { %v962_v45 = vadd.f32 %v961_v44, %v927_v59 }
 0x49c   :  { %v973_v22 = vmul.f32 0.006666667, %v962_v45 }
 0x49e   :  { %v1196_v34 = vpop.eup %1195  ;;  %v983_v42 = vmax.f32 %v973_v22, 1e-06 }
 0x49f   :  { %v1001_v33 = vmul.f32 0.6931472, %v1196_v34 }
 0x4a0   :  { %1197 = vlog2.f32 %v983_v42 }
 0x4a1   :  { %1013 = vst.msk [vmem:[%s1713_s5 + $0x40] sm:$0xff] %vm1004_vm3, %v1001_v33 }
 0x4a6   :  { %v1198_v55 = vpop.eup %1197 }
 0x4a7   :  { %v1003_v10 = vmul.f32 0.6931472, %v1198_v55 }
 0x4a9   :  { %1014 = vst.msk [vmem:[%s1713_s5 + $0x48] sm:$0xff] %vm1004_vm3, %v1003_v10 }

</bundles_post_ra>
